<compile_context>
chip_gen: v6e
topology: v6e:2x2x1
jax: 0.10.0
libtpu: 0.0.40
codegen_flags: <defaults>
</compile_context>

<pallas_src>
import functools
from typing import NamedTuple

import jax
import jax.numpy as jnp
from jax.experimental import pallas as pl
from jax.experimental.pallas import tpu as pltpu

_MiB = 1024 * 1024


def _round_up(n: int, m: int) -> int:
    return (n + m - 1) // m * m


# ---------------------------------------------------------------------------
# One-time capability probes (no per-call try/except, no double compiles).
# ---------------------------------------------------------------------------
_BUFFERED_OK = None


def _buffered_supported() -> bool:
    """Probe (once, cached) whether pl.Buffered(1) single-buffering lowers."""
    global _BUFFERED_OK
    if _BUFFERED_OK is None:
        ok = False
        if hasattr(pl, "Buffered"):
            try:
                def _copy(x_ref, o_ref):
                    o_ref[...] = x_ref[...]

                out = pl.pallas_call(
                    _copy,
                    out_shape=jax.ShapeDtypeStruct((8, 128), jnp.float32),
                    grid_spec=pltpu.PrefetchScalarGridSpec(
                        num_scalar_prefetch=0,
                        grid=(1,),
                        in_specs=[pl.BlockSpec((8, 128), lambda i: (0, 0),
                                               pipeline_mode=pl.Buffered(1))],
                        out_specs=pl.BlockSpec((8, 128), lambda i: (0, 0)),
                    ),
                )(jnp.zeros((8, 128), jnp.float32))
                jax.block_until_ready(out)
                ok = True
            except Exception:
                ok = False
        _BUFFERED_OK = ok
    return _BUFFERED_OK


@functools.lru_cache(maxsize=1)
def _physical_vmem_bytes() -> int:
    """Per-TensorCore VMEM capacity; conservative fallback if unqueryable."""
    try:
        info = pltpu.get_tpu_info()
        v = getattr(info, "vmem_capacity_bytes", None)
        if v:
            return int(v)
    except Exception:
        pass
    return 64 * _MiB  # v7x per-TC size: safe lower bound for v5e/v6e too.


def _const_spec(shape, index_map, single_buffer: bool) -> pl.BlockSpec:
    """BlockSpec for constant-index (weight/bias) blocks."""
    if single_buffer:
        return pl.BlockSpec(shape, index_map, pipeline_mode=pl.Buffered(1))
    return pl.BlockSpec(shape, index_map)


def _pick_hidden_tile(h_pad: int, th_cap: int) -> int:
    """Largest multiple of 128 that divides h_pad and is <= th_cap."""
    n128 = h_pad // 128
    cap = max(1, th_cap // 128)
    best = 1
    for d in range(1, n128 + 1):
        if n128 % d == 0 and d <= cap:
            best = d
    return best * 128


# ---------------------------------------------------------------------------
# Kernels.
# ---------------------------------------------------------------------------
def _mlp_kernel_resident(x_ref, w1_ref, b1_ref, w2_ref, b2_ref, o_ref, *,
                         compute_dtype):
    """Grid = (batch_tiles,). Full weights resident: no accumulator scratch."""
    h = jnp.dot(x_ref[...], w1_ref[...], preferred_element_type=jnp.float32)
    h = jnp.maximum(h + b1_ref[...], 0.0)
    y = jnp.dot(h.astype(compute_dtype), w2_ref[...],
                preferred_element_type=jnp.float32)
    o_ref[...] = (y + b2_ref[...]).astype(o_ref.dtype)


def _mlp_kernel_tiled(x_ref, w1_ref, b1_ref, w2_ref, b2_ref, o_ref, acc_ref, *,
                      compute_dtype):
    """Grid = (batch_tiles, hidden_tiles); hidden axis accumulates into acc."""
    h_idx = pl.program_id(1)

    @pl.when(h_idx == 0)
    def _init():
        acc_ref[...] = jnp.zeros_like(acc_ref)

    h = jnp.dot(x_ref[...], w1_ref[...], preferred_element_type=jnp.float32)
    h = jnp.maximum(h + b1_ref[...], 0.0)
    # Consume the ReLU'd hidden chunk immediately into the output accumulator.
    acc_ref[...] += jnp.dot(h.astype(compute_dtype), w2_ref[...],
                            preferred_element_type=jnp.float32)

    @pl.when(h_idx == pl.num_programs(1) - 1)
    def _finalize():
        o_ref[...] = (acc_ref[...] + b2_ref[...]).astype(o_ref.dtype)


# ---------------------------------------------------------------------------
# Parameter preparation (run ONCE, reuse across calls).
# ---------------------------------------------------------------------------
class MLPParams(NamedTuple):
    w1: jax.Array       # (in_dim, H_pad)  compute dtype
    b1: jax.Array       # (1, H_pad)       f32
    w2: jax.Array       # (H_pad, out_pad) compute dtype
    b2: jax.Array       # (1, out_pad)     f32
    in_dim: int
    hidden: int
    out_dim: int


def prepare_params(w1, b1, w2, b2, *, compute_dtype=jnp.bfloat16) -> MLPParams:
    """Transpose to (in,out), zero-pad hidden/out to multiples of 128, cast.

    w1: (hidden, in_dim), b1: (hidden,), w2: (out_dim, hidden), b2: (out_dim,)
    -- PyTorch nn.Linear convention.  compute_dtype=bf16 is the production
    path (f32 MXU accumulation); float32 is the exact/debug path (slow on v5e).
    """
    hidden, in_dim = w1.shape
    out_dim = w2.shape[0]
    h_pad = _round_up(hidden, 128)
    out_pad = _round_up(out_dim, 128)
    w1_p = jnp.pad(w1.T, ((0, 0), (0, h_pad - hidden))).astype(compute_dtype)
    b1_p = jnp.pad(b1, (0, h_pad - hidden)).astype(jnp.float32).reshape(1, h_pad)
    w2_p = jnp.pad(w2.T, ((0, h_pad - hidden), (0, out_pad - out_dim))
                   ).astype(compute_dtype)
    b2_p = jnp.pad(b2, (0, out_pad - out_dim)).astype(jnp.float32).reshape(1, out_pad)
    return MLPParams(w1_p, b1_p, w2_p, b2_p, in_dim, hidden, out_dim)


# ---------------------------------------------------------------------------
# Forward.
# ---------------------------------------------------------------------------
def mlp_forward(x, params: MLPParams, *, tm=None, th=None,
                vmem_budget_bytes=None):
    """Fused MLP forward: relu(x @ W1 + b1) @ W2 + b2.

    x: (B, in_dim).  params: output of prepare_params (reused across calls).
    Returns (B, out_dim) in x.dtype.  jit-safe (no host blocking inside).
    """
    compute_dtype = params.w1.dtype
    out_dtype = x.dtype
    B, in_dim = x.shape
    assert in_dim == params.in_dim, "x feature dim does not match params"
    hidden, out_dim = params.hidden, params.out_dim
    h_pad = params.w1.shape[1]
    out_pad = params.w2.shape[1]
    w_bytes = jnp.dtype(compute_dtype).itemsize
    out_bytes = jnp.dtype(out_dtype).itemsize

    physical = _physical_vmem_bytes()
    if vmem_budget_bytes is None:
        # ~40 MiB on v7x (64 MiB VMEM), up to 96 MiB on v5e/v6e (128 MiB).
        vmem_budget_bytes = max(32 * _MiB, min(96 * _MiB, physical - 24 * _MiB))
    if tm is None:
        tm = 512 if physical >= 96 * _MiB else 256

    # --- batch tile: big, aligned to vreg packing (16 rows bf16 / 8 rows f32),
    #     and split into >= 2 tiles when possible (v7x megacore).
    align = 16 if w_bytes == 2 else 8
    tm_eff = min(tm, _round_up(max(B, align), align))
    b_pad = _round_up(B, tm_eff)
    while b_pad // tm_eff < 2 and tm_eff > 128:
        tm_eff = max(128, _round_up(tm_eff // 2, align))
        b_pad = _round_up(B, tm_eff)

    x_p = jnp.pad(x, ((0, b_pad - B), (0, 0))).astype(compute_dtype)

    use_buffered = _buffered_supported()
    w_bufs = 1 if use_buffered else 2

    def _limit(est):
        return int(min(physical - 8 * _MiB,
                       max(32 * _MiB, int(est * 1.4), est + 4 * _MiB)))

    # Resident-weight footprint (includes the (tm, H) f32 hidden intermediate
    # and its compute-dtype cast that Mosaic materializes).
    est_resident = (w_bufs * ((in_dim * h_pad + h_pad * out_pad) * w_bytes
                              + (h_pad + out_pad) * 4)
                    + 2 * tm_eff * in_dim * w_bytes
                    + 2 * tm_eff * out_pad * out_bytes
                    + tm_eff * h_pad * (4 + w_bytes))

    resident = (th >= hidden) if th is not None else (est_resident <= vmem_budget_bytes)

    if resident:
        in_specs = [
            pl.BlockSpec((tm_eff, in_dim), lambda i: (i, 0)),
            _const_spec((in_dim, h_pad), lambda i: (0, 0), use_buffered),
            _const_spec((1, h_pad), lambda i: (0, 0), use_buffered),
            _const_spec((h_pad, out_pad), lambda i: (0, 0), use_buffered),
            _const_spec((1, out_pad), lambda i: (0, 0), use_buffered),
        ]
        out_padded = pl.pallas_call(
            functools.partial(_mlp_kernel_resident, compute_dtype=compute_dtype),
            out_shape=jax.ShapeDtypeStruct((b_pad, out_pad), out_dtype),
            grid_spec=pltpu.PrefetchScalarGridSpec(
                num_scalar_prefetch=0,
                grid=(b_pad // tm_eff,),
                in_specs=in_specs,
                out_specs=pl.BlockSpec((tm_eff, out_pad), lambda i: (i, 0)),
            ),
            compiler_params=pltpu.CompilerParams(
                dimension_semantics=("parallel",),
                vmem_limit_bytes=_limit(est_resident),
            ),
        )(x_p, params.w1, params.b1, params.w2, params.b2)
    else:
        # Hidden-tiled fallback: derive the largest th that fits the budget.
        # TODO(synk): add an output-dim (N) grid axis for very wide out layers.
        fixed = (2 * out_pad * 4
                 + 2 * tm_eff * in_dim * w_bytes
                 + 2 * tm_eff * out_pad * out_bytes
                 + tm_eff * out_pad * 4)
        per_th = 2 * ((in_dim + out_pad) * w_bytes + 4) + tm_eff * (4 + w_bytes)
        th_budget = max(128, (vmem_budget_bytes - fixed) // per_th)
        th_cap = min(th_budget, _round_up(th, 128)) if th is not None else th_budget
        th_eff = _pick_hidden_tile(h_pad, th_cap)
        nh = h_pad // th_eff

        est_tiled = (2 * ((in_dim * th_eff + th_eff * out_pad) * w_bytes + th_eff * 4)
                     + 2 * out_pad * 4
                     + 2 * tm_eff * in_dim * w_bytes
                     + 2 * tm_eff * out_pad * out_bytes
                     + tm_eff * out_pad * 4
                     + tm_eff * th_eff * (4 + w_bytes))

        in_specs = [
            pl.BlockSpec((tm_eff, in_dim), lambda i, h: (i, 0)),
            pl.BlockSpec((in_dim, th_eff), lambda i, h: (0, h)),
            pl.BlockSpec((1, th_eff), lambda i, h: (0, h)),
            pl.BlockSpec((th_eff, out_pad), lambda i, h: (h, 0)),
            _const_spec((1, out_pad), lambda i, h: (0, 0), use_buffered),
        ]
        out_padded = pl.pallas_call(
            functools.partial(_mlp_kernel_tiled, compute_dtype=compute_dtype),
            out_shape=jax.ShapeDtypeStruct((b_pad, out_pad), out_dtype),
            grid_spec=pltpu.PrefetchScalarGridSpec(
                num_scalar_prefetch=0,
                grid=(b_pad // tm_eff, nh),
                in_specs=in_specs,
                out_specs=pl.BlockSpec((tm_eff, out_pad), lambda i, h: (i, 0)),
                scratch_shapes=[pltpu.VMEM((tm_eff, out_pad), jnp.float32)],
            ),
            compiler_params=pltpu.CompilerParams(
                dimension_semantics=("parallel", "arbitrary"),
                vmem_limit_bytes=_limit(est_tiled),
            ),
        )(x_p, params.w1, params.b1, params.w2, params.b2)

    return out_padded[:B, :out_dim]


def mlp_forward_raw(x, w1, b1, w2, b2, *, compute_dtype=jnp.bfloat16, **kw):
    """Convenience wrapper for raw PyTorch-layout weights (re-preps per call;
    prefer prepare_params + mlp_forward for repeated calls)."""
    return mlp_forward(x, prepare_params(w1, b1, w2, b2,
                                         compute_dtype=compute_dtype), **kw)


def init_params(key, in_dim, hidden, out_dim):
    """Deterministic init mirroring nn.Linear's U(-1/sqrt(fan_in), 1/sqrt(fan_in))."""
    k1, k2, k3, k4 = jax.random.split(key, 4)
    bound1 = 1.0 / jnp.sqrt(in_dim)
    bound2 = 1.0 / jnp.sqrt(hidden)
    w1 = jax.random.uniform(k1, (hidden, in_dim), jnp.float32, -bound1, bound1)
    b1 = jax.random.uniform(k2, (hidden,), jnp.float32, -bound1, bound1)
    w2 = jax.random.uniform(k3, (out_dim, hidden), jnp.float32, -bound2, bound2)
    b2 = jax.random.uniform(k4, (out_dim,), jnp.float32, -bound2, bound2)
    return w1, b1, w2, b2


if __name__ == "__main__":
    in_dim, hidden, out_dim = 16, 32, 8
    batch = 128

    key = jax.random.PRNGKey(0)
    kx, kp = jax.random.split(key)
    x = jax.random.normal(kx, (batch, in_dim), jnp.float32)
    w1, b1, w2, b2 = init_params(kp, in_dim, hidden, out_dim)

    # Pure-JAX reference (same math as nn.Sequential(Linear, ReLU, Linear)).
    ref = jnp.maximum(x @ w1.T + b1, 0.0) @ w2.T + b2

    # 1) Production path: weights prepared once (bf16 MXU operands, f32 acc),
    #    resident-weight kernel (no accumulator scratch).
    params_bf16 = prepare_params(w1, b1, w2, b2)              # prep ONCE
    out_bf16 = jax.block_until_ready(mlp_forward(x, params_bf16))
    out_bf16_again = jax.block_until_ready(mlp_forward(x, params_bf16))  # reuse
    assert out_bf16.shape == (batch, out_dim)
    assert jnp.allclose(out_bf16, ref, atol=2e-2, rtol=2e-2), "bf16 path mismatch"
    assert jnp.allclose(out_bf16_again, out_bf16), "reused-params mismatch"

    # 2) Exact f32 path (debug/verification; slow on v5e's MXU).
    params_f32 = prepare_params(w1, b1, w2, b2, compute_dtype=jnp.float32)
    out_f32 = jax.block_until_ready(mlp_forward(x, params_f32))
    assert jnp.allclose(out_f32, ref, atol=1e-5, rtol=1e-5), "f32 path mismatch"

    # 3) Hidden-tiled accumulator fallback, exercised on a ragged batch to
    #    cover the padding logic too.
    hidden2 = 256
    w1b, b1b, w2b, b2b = init_params(jax.random.PRNGKey(1), in_dim, hidden2, out_dim)
    x_ragged = x[:100]
    ref2 = jnp.maximum(x_ragged @ w1b.T + b1b, 0.0) @ w2b.T + b2b
    params2 = prepare_params(w1b, b1b, w2b, b2b, compute_dtype=jnp.float32)
    out2 = jax.block_until_ready(mlp_forward(x_ragged, params2, th=128))
    assert out2.shape == (100, out_dim)
    assert jnp.allclose(out2, ref2, atol=1e-5, rtol=1e-5), "hidden-tiled path mismatch"

    print("KERNEL_OK")
</pallas_src>

<mosaic_0001>
module attributes {stable_mosaic.version = 11 : i64} {
  func.func @_copy(%arg0: i32, %arg1: memref<8x128xf32, #tpu.memory_space<vmem>>, %arg2: memref<8x128xf32, #tpu.memory_space<vmem>>) attributes {dimension_semantics = [#tpu.dimension_semantics<arbitrary>], iteration_bounds = array<i64: 1>, scalar_prefetch = 0 : i64, scratch_operands = 0 : i64, tpu.core_type = #tpu.core_type<tc>, window_params = [{pipeline_mode = #tpu.pipeline_mode<synchronous>, transform_indices = @transform_0, window_bounds = array<i64: 8, 128>}, {pipeline_mode = #tpu.pipeline_mode<synchronous>, transform_indices = @transform_1, window_bounds = array<i64: 8, 128>}]} {
    %c0 = arith.constant 0 : index
    %c0_0 = arith.constant 0 : index
    %0 = vector.load %arg1[%c0, %c0_0] : memref<8x128xf32, #tpu.memory_space<vmem>>, vector<8x128xf32>
    %c0_1 = arith.constant 0 : index
    %c0_2 = arith.constant 0 : index
    %1 = vector.load %arg2[%c0_1, %c0_2] : memref<8x128xf32, #tpu.memory_space<vmem>>, vector<8x128xf32>
    tpu.vector_store %arg2[%c0_1, %c0_2], %0 {strides = array<i32>} : memref<8x128xf32, #tpu.memory_space<vmem>>, vector<8x128xf32>,
    return
  }
  func.func @transform_0(%arg0: i32) -> (i32, i32) {
    %c0_i32 = arith.constant 0 : i32
    %c0_i32_0 = arith.constant 0 : i32
    %c0_i32_1 = arith.constant 0 : i32
    return %c0_i32, %c0_i32_0 : i32, i32
  }
  func.func @transform_1(%arg0: i32) -> (i32, i32) {
    %c0_i32 = arith.constant 0 : i32
    %c0_i32_0 = arith.constant 0 : i32
    %c0_i32_1 = arith.constant 0 : i32
    return %c0_i32, %c0_i32_0 : i32, i32
  }
}

module attributes {stable_mosaic.version = 11 : i64} {
  func.func @_mlp_kernel_resident(%arg0: i32, %arg1: memref<128x16xbf16, #tpu.memory_space<vmem>>, %arg2: memref<16x128xbf16, #tpu.memory_space<vmem>>, %arg3: memref<1x128xf32, #tpu.memory_space<vmem>>, %arg4: memref<128x128xbf16, #tpu.memory_space<vmem>>, %arg5: memref<1x128xf32, #tpu.memory_space<vmem>>, %arg6: memref<128x128xf32, #tpu.memory_space<vmem>>) attributes {dimension_semantics = [#tpu.dimension_semantics<parallel>], iteration_bounds = array<i64: 1>, scalar_prefetch = 0 : i64, scratch_operands = 0 : i64, tpu.core_type = #tpu.core_type<tc>, window_params = [{transform_indices = @transform_0, window_bounds = array<i64: 128, 16>}, {pipeline_mode = #tpu.pipeline_mode<synchronous>, transform_indices = @transform_1, window_bounds = array<i64: 16, 128>}, {pipeline_mode = #tpu.pipeline_mode<synchronous>, transform_indices = @transform_2, window_bounds = array<i64: 1, 128>}, {pipeline_mode = #tpu.pipeline_mode<synchronous>, transform_indices = @transform_3, window_bounds = array<i64: 128, 128>}, {pipeline_mode = #tpu.pipeline_mode<synchronous>, transform_indices = @transform_4, window_bounds = array<i64: 1, 128>}, {transform_indices = @transform_5, window_bounds = array<i64: 128, 128>}]} {
    %c0 = arith.constant 0 : index
    %c0_0 = arith.constant 0 : index
    %0 = vector.load %arg1[%c0, %c0_0] : memref<128x16xbf16, #tpu.memory_space<vmem>>, vector<128x16xbf16>
    %c0_1 = arith.constant 0 : index
    %c0_2 = arith.constant 0 : index
    %1 = vector.load %arg2[%c0_1, %c0_2] : memref<16x128xbf16, #tpu.memory_space<vmem>>, vector<16x128xbf16>
    %cst = arith.constant dense<0.000000e+00> : vector<128x128xf32>
    %2 = tpu.matmul %0, %1, %cst {dimension_numbers = #tpu.dot_dimension_numbers<[1], [0], [0], [1], [0, 0, 1, 1], [], []>} : vector<128x16xbf16>, vector<16x128xbf16>, vector<128x128xf32> -> vector<128x128xf32>
    %c0_3 = arith.constant 0 : index
    %c0_4 = arith.constant 0 : index
    %3 = vector.load %arg3[%c0_3, %c0_4] : memref<1x128xf32, #tpu.memory_space<vmem>>, vector<1x128xf32>
    %4 = vector.broadcast %3 : vector<1x128xf32> to vector<128x128xf32>
    %5 = arith.addf %2, %4 : vector<128x128xf32>
    %cst_5 = arith.constant 0.000000e+00 : f32
    %6 = vector.broadcast %cst_5 : f32 to vector<128x128xf32>
    %7 = arith.maximumf %5, %6 : vector<128x128xf32>
    %8 = arith.truncf %7 : vector<128x128xf32> to vector<128x128xbf16>
    %c0_6 = arith.constant 0 : index
    %c0_7 = arith.constant 0 : index
    %9 = vector.load %arg4[%c0_6, %c0_7] : memref<128x128xbf16, #tpu.memory_space<vmem>>, vector<128x128xbf16>
    %cst_8 = arith.constant dense<0.000000e+00> : vector<128x128xf32>
    %10 = tpu.matmul %8, %9, %cst_8 {dimension_numbers = #tpu.dot_dimension_numbers<[1], [0], [0], [1], [0, 0, 1, 1], [], []>} : vector<128x128xbf16>, vector<128x128xbf16>, vector<128x128xf32> -> vector<128x128xf32>
    %c0_9 = arith.constant 0 : index
    %c0_10 = arith.constant 0 : index
    %11 = vector.load %arg5[%c0_9, %c0_10] : memref<1x128xf32, #tpu.memory_space<vmem>>, vector<1x128xf32>
    %12 = vector.broadcast %11 : vector<1x128xf32> to vector<128x128xf32>
    %13 = arith.addf %10, %12 : vector<128x128xf32>
    %c0_11 = arith.constant 0 : index
    %c0_12 = arith.constant 0 : index
    %14 = vector.load %arg6[%c0_11, %c0_12] : memref<128x128xf32, #tpu.memory_space<vmem>>, vector<128x128xf32>
    tpu.vector_store %arg6[%c0_11, %c0_12], %13 {strides = array<i32>} : memref<128x128xf32, #tpu.memory_space<vmem>>, vector<128x128xf32>,
    return
  }
  func.func @transform_0(%arg0: i32) -> (i32, i32) {
    %c0_i32 = arith.constant 0 : i32
    %c0_i32_0 = arith.constant 0 : i32
    return %arg0, %c0_i32 : i32, i32
  }
  func.func @transform_1(%arg0: i32) -> (i32, i32) {
    %c0_i32 = arith.constant 0 : i32
    %c0_i32_0 = arith.constant 0 : i32
    %c0_i32_1 = arith.constant 0 : i32
    return %c0_i32, %c0_i32_0 : i32, i32
  }
  func.func @transform_2(%arg0: i32) -> (i32, i32) {
    %c0_i32 = arith.constant 0 : i32
    %c0_i32_0 = arith.constant 0 : i32
    %c0_i32_1 = arith.constant 0 : i32
    return %c0_i32, %c0_i32_0 : i32, i32
  }
  func.func @transform_3(%arg0: i32) -> (i32, i32) {
    %c0_i32 = arith.constant 0 : i32
    %c0_i32_0 = arith.constant 0 : i32
    %c0_i32_1 = arith.constant 0 : i32
    return %c0_i32, %c0_i32_0 : i32, i32
  }
  func.func @transform_4(%arg0: i32) -> (i32, i32) {
    %c0_i32 = arith.constant 0 : i32
    %c0_i32_0 = arith.constant 0 : i32
    %c0_i32_1 = arith.constant 0 : i32
    return %c0_i32, %c0_i32_0 : i32, i32
  }
  func.func @transform_5(%arg0: i32) -> (i32, i32) {
    %c0_i32 = arith.constant 0 : i32
    %c0_i32_0 = arith.constant 0 : i32
    return %arg0, %c0_i32 : i32, i32
  }
}

</mosaic_0001>

<bundles_post_ra>
// kernel: tpu_custom_call.1
= control target key start
LH: loop header
LB: loop body
LE: loop exit
PB: predicated region body
PF: predicated region fallthrough
CT: control target
= control target key end

     0   :  { %6 = vsyncpa [#allocation3], 0  ;;  %s102_s0 = inlined_call_operand.hbm [shape: f32[8,128], index: 0, kind: input, shape index: {}]   ;;  %s103_s1 = inlined_call_operand.hbm [shape: f32[8,128], index: 1, kind: output, shape index: {}]  }
   0x1   :  { %7 = vsyncpa [#allocation4], 0  ;;  %s84_s6 = smov [#allocation2]  }
   0x2   :  { %s14_s7 = sshll.u32 %s84_s6, 4  ;;  %s15_s7 = int_to_ptr.vmem [resolvable:$true] %s14_s7 }
   0x3   :  { %s48_s8 = scalar_lea.vmem %s15_s7, 128  ;;  %p53_p1 = scmp.lt.s32.totalorder %s15_s7, %s15_s7 }
   0x4   :  { %p49_p0 = scmp.ne.s32.totalorder %s15_s7, %s48_s8  ;;  %p54_p2 = scmp.lt.s32.totalorder %s48_s8, %s48_s8 }
   0x6   :  { %p55_p3 = por %p54_p2, %p53_p1 }
   0x8   :  { %p56_p4 = pnand %p55_p3, %p49_p0 }
   0xa   :  { %59 = shalt.err (!%p56_p4)
}
   0xb   :  { %17 = dma.hbm_to_vmem [thread:$0]  %s102_s0, 128, %s15_s7, [#allocation3]  }
   0xc   :  { %80 = dma.done.wait [#allocation3], 128  }
   0xd   :  { %81 = vsyncadd [#allocation3], 4294967168  ;;  %s85_s11 = smov [#allocation5]   ;;  %v21_v0 = vld [vmem:[#allocation2] sm:$0xff] }
   0xe   :  { %s29_s12 = sshll.u32 %s85_s11, 4  ;;  %22 = vst [vmem:[#allocation5] sm:$0xff] %v21_v0  ;;  %s30_s12 = int_to_ptr.vmem [resolvable:$true] %s29_s12 }
   0xf   :  { %s60_s13 = scalar_lea.vmem %s30_s12, 128  ;;  %p65_p6 = scmp.lt.s32.totalorder %s30_s12, %s30_s12 }
  0x10   :  { %p61_p5 = scmp.ne.s32.totalorder %s30_s12, %s60_s13  ;;  %p66_p7 = scmp.lt.s32.totalorder %s60_s13, %s60_s13 }
  0x12   :  { %p67_p8 = por %p66_p7, %p65_p6 }
  0x14   :  { %p68_p9 = pnand %p67_p8, %p61_p5 }
  0x16   :  { %71 = shalt.err (!%p68_p9)
}
  0x17   :  { %32 = dma.vmem_to_hbm [thread:$0]  %s30_s12, 128, %s103_s1, [#allocation4]  }
  0x18   :  { %82 = dma.done.wait [#allocation4], 128  }
  0x19   :  { %83 = vsyncadd [#allocation4], 4294967168 }
  0x1a   :  { %36 = vsyncpa [#allocation3], 1 }
  0x1b   :  { %37 = vsyncpa [#allocation4], 1 }

// kernel: tpu_custom_call.1
= control target key start
LH: loop header
LB: loop body
LE: loop exit
PB: predicated region body
PF: predicated region fallthrough
CT: control target
= control target key end

     0   :  { %vm93_vm0 = vcmask 130048   ;;  %s700_s0 = inlined_call_operand.vmem [shape: bf16[128,16], index: 0, kind: input, shape index: {}]   ;;  %s701_s1 = inlined_call_operand.vmem [shape: bf16[16,128], index: 1, kind: input, shape index: {}]   ;;  %s702_s2 = inlined_call_operand.vmem [shape: f32[1,128], index: 2, kind: input, shape index: {}]   ;;  %s703_s3 = inlined_call_operand.vmem [shape: bf16[128,128], index: 3, kind: input, shape index: {}]   ;;  %s704_s4 = inlined_call_operand.vmem [shape: f32[1,128], index: 4, kind: input, shape index: {}]   ;;  %s705_s5 = inlined_call_operand.hbm [shape: f32[128,128], index: 5, kind: output, shape index: {}]  }
   0x1   :  { %v560_v0 = vld [vmem:[%s701_s1] sm:$0xff]   ;;  %v562_v2 = vld [vmem:[%s700_s0 + $0x8] sm:$0xff]   ;;  %v563_v3 = vld [vmem:[%s700_s0 + $0x10] sm:$0xff]  }
   0x2   :  { %v561_v1 = vld [vmem:[%s700_s0] sm:$0xff]   ;;  %491 = vmatprep.subr.bf16.mxu0 %v560_v0  ;;  %v564_v4 = vld [vmem:[%s700_s0 + $0x18] sm:$0xff]   ;;  %v570_v6 = vld [vmem:[%s703_s3 + $0x30] sm:$0xff]  }
   0x3   :  { %492 = vmatpush3.bf16.msra.mxu0 %v560_v0  ;;  %493 = vmatprep.mubr.msk.bf16.mxu0 %vm93_vm0, %v561_v1  ;;  %v569_v5 = vld [vmem:[%s703_s3 + $0x38] sm:$0xff]   ;;  %v565_v7 = vld [vmem:[%s700_s0 + $0x20] sm:$0xff]   ;;  %v571_v8 = vld [vmem:[%s703_s3 + $0x28] sm:$0xff]  }
   0x4   :  { %509 = vmatprep.subr.bf16.mxu0 %v569_v5  ;;  %541 = vmatprep.subr.bf16.mxu1 %v569_v5 }
   0x5   :  { %549 = vmatpush3.bf16.msra.mxu1 %v569_v5 }
   0x6   :  { %494 = vmatmul.mubr.msk.bf16.vlgmr.msra.gmra.mxu0 %vm93_vm0, %v562_v2  ;;  %542 = vmatprep.subr.bf16.mxu1 %v570_v6 }
   0x7   :  { %497 = vmatprep.mubr.msk.bf16.mxu0 %vm93_vm0, %v563_v3  ;;  %510 = vmatpush3.bf16.msra.mxu0 %v569_v5 }
   0x8   :  { %511 = vmatprep.subr.bf16.mxu0 %v570_v6 }
   0x9   :  { %550 = vmatpush3.bf16.msra.mxu1 %v570_v6 }
   0xb   :  { %512 = vmatpush3.bf16.msra.mxu0 %v570_v6 }
   0xe   :  { %498 = vmatmul.mubr.msk.bf16.gmra.mxu0 %vm93_vm0, %v564_v4 }
   0xf   :  { %501 = vmatprep.mubr.msk.bf16.mxu0 %vm93_vm0, %v565_v7 }
  0x10   :  { %10 = vsyncpa [#allocation3], 0  ;;  %513 = vmatprep.subr.bf16.mxu0 %v571_v8  ;;  %v572_v9 = vld [vmem:[%s703_s3 + $0x20] sm:$0xff]   ;;  %543 = vmatprep.subr.bf16.mxu1 %v571_v8  ;;  %v566_v10 = vld [vmem:[%s700_s0 + $0x28] sm:$0xff]  }
  0x11   :  { %v567_v11 = vld [vmem:[%s700_s0 + $0x30] sm:$0xff]   ;;  %514 = vmatpush3.bf16.msra.mxu0 %v571_v8  ;;  %551 = vmatpush3.bf16.msra.mxu1 %v571_v8  ;;  %v573_v12 = vld [vmem:[%s703_s3 + $0x18] sm:$0xff]   ;;  %v575_v15 = vld [vmem:[%s703_s3 + $0x8] sm:$0xff]  }
  0x12   :  { %515 = vmatprep.subr.bf16.mxu0 %v572_v9  ;;  %544 = vmatprep.subr.bf16.mxu1 %v572_v9  ;;  %v568_v13 = vld [vmem:[%s700_s0 + $0x38] sm:$0xff]   ;;  %v574_v14 = vld [vmem:[%s703_s3 + $0x10] sm:$0xff]   ;;  %v576_v16 = vld [vmem:[%s703_s3] sm:$0xff]  }
  0x13   :  { %v439_v19 = vld [vmem:[%s702_s2] ss:$0 sm:$0xff] }
  0x15   :  { %516 = vmatpush3.bf16.msra.mxu0 %v572_v9  ;;  %552 = vmatpush3.bf16.msra.mxu1 %v572_v9 }
  0x16   :  { %502 = vmatmul.mubr.msk.bf16.gmra.mxu0 %vm93_vm0, %v566_v10  ;;  %517 = vmatprep.subr.bf16.mxu0 %v573_v12  ;;  %v457_v10 = vld [vmem:[%s704_s4] ss:$0 sm:$0xff]  ;;  %s599_s4 = smov [#allocation2]  }
  0x17   :  { %505 = vmatprep.mubr.msk.bf16.mxu0 %vm93_vm0, %v567_v11  ;;  %545 = vmatprep.subr.bf16.mxu1 %v573_v12  ;;  %s428_s26 = sshll.u32 %s599_s4, 4  ;;  %s429_s26 = int_to_ptr.vmem [resolvable:$true] %s428_s26 }
  0x18   :  { %s577_s27 = scalar_lea.vmem %s429_s26, 2048  ;;  %p582_p1 = scmp.lt.s32.totalorder %s429_s26, %s429_s26 }
  0x19   :  { %518 = vmatpush3.bf16.msra.mxu0 %v573_v12  ;;  %553 = vmatpush3.bf16.msra.mxu1 %v573_v12  ;;  %p578_p0 = scmp.ne.s32.totalorder %s429_s26, %s577_s27  ;;  %p583_p2 = scmp.lt.s32.totalorder %s577_s27, %s577_s27 }
  0x1a   :  { %519 = vmatprep.subr.bf16.mxu0 %v574_v14  ;;  %546 = vmatprep.subr.bf16.mxu1 %v574_v14 }
  0x1b   :  { %p584_p3 = por %p583_p2, %p582_p1 }
  0x1d   :  { %520 = vmatpush3.bf16.msra.mxu0 %v574_v14  ;;  %554 = vmatpush3.bf16.msra.mxu1 %v574_v14  ;;  %p585_p4 = pnand %p584_p3, %p578_p0 }
  0x1e   :  { %506 = vmatmul.mubr.msk.bf16.gmra.mxu0 %vm93_vm0, %v568_v13  ;;  %521 = vmatprep.subr.bf16.mxu0 %v575_v15 }
  0x1f   :  { %547 = vmatprep.subr.bf16.mxu1 %v575_v15 }
  0x21   :  { %522 = vmatpush3.bf16.msra.mxu0 %v575_v15  ;;  %555 = vmatpush3.bf16.msra.mxu1 %v575_v15 }
  0x22   :  { %523 = vmatprep.subr.bf16.mxu0 %v576_v16  ;;  %548 = vmatprep.subr.bf16.mxu1 %v576_v16 }
  0x25   :  { %524 = vmatpush3.bf16.msra.mxu0 %v576_v16  ;;  %556 = vmatpush3.bf16.msra.mxu1 %v576_v16 }
  0xc6   :  { %v495_v17 = vpop.f32.mrf.mxu0 }
  0xc7   :  { %v161_v23 = vadd.f32 %v495_v17, %v439_v19 }
  0xc8   :  { %v152_v18 = vpop.f32.mrf.mxu0 }
  0xc9   :  { %v153_v21 = vadd.f32 %v439_v19, %v152_v18  ;;  %v217_v30 = vmax.f32 %v161_v23, 0.0 }
  0xca   :  { %v496_v20 = vpop.f32.mrf.mxu0 }
  0xcb   :  { %v164_v22 = vadd.f32 %v496_v20, %v439_v19  ;;  %v215_v28 = vmax.f32 %v153_v21, 0.0 }
  0xcc   :  { %v155_v24 = vpop.f32.mrf.mxu0 }
  0xcd   :  { %v156_v25 = vadd.f32 %v439_v19, %v155_v24  ;;  %v218_v26 = vmax.f32 %v164_v22, 0.0 }
  0xce   :  { %v499_v27 = vpop.f32.mrf.mxu0 }
  0xcf   :  { %v216_v29 = vmax.f32 %v156_v25, 0.0  ;;  %v232_v33 = vpack.c.bf16 %v218_v26, %v217_v30  ;;  %v177_v37 = vadd.f32 %v499_v27, %v439_v19 }
  0xd0   :  { %v168_v31 = vpop.f32.mrf.mxu0 }
  0xd1   :  { %v231_v32 = vpack.c.bf16 %v216_v29, %v215_v28  ;;  %v169_v35 = vadd.f32 %v439_v19, %v168_v31  ;;  %v221_v44 = vmax.f32 %v177_v37, 0.0 }
  0xd2   :  { %v500_v34 = vpop.f32.mrf.mxu0 }
  0xd3   :  { %v180_v36 = vadd.f32 %v500_v34, %v439_v19  ;;  %525 = vmatprep.mubr.bf16.mxu0 %v231_v32  ;;  %v219_v42 = vmax.f32 %v169_v35, 0.0 }
  0xd4   :  { %v171_v38 = vpop.f32.mrf.mxu0  ;;  %526 = vmatmul.mubr.bf16.vlgmr.msra.gmra.mxu0 %v232_v33 }
  0xd5   :  { %v172_v39 = vadd.f32 %v439_v19, %v171_v38  ;;  %v222_v40 = vmax.f32 %v180_v36, 0.0 }
  0xd6   :  { %v503_v41 = vpop.f32.mrf.mxu0 }
  0xd7   :  { %v220_v43 = vmax.f32 %v172_v39, 0.0  ;;  %v234_v47 = vpack.c.bf16 %v222_v40, %v221_v44  ;;  %v193_v51 = vadd.f32 %v503_v41, %v439_v19 }
  0xd8   :  { %v184_v45 = vpop.f32.mrf.mxu0 }
  0xd9   :  { %v233_v46 = vpack.c.bf16 %v220_v43, %v219_v42  ;;  %v185_v49 = vadd.f32 %v439_v19, %v184_v45  ;;  %v225_v58 = vmax.f32 %v193_v51, 0.0 }
  0xda   :  { %v504_v48 = vpop.f32.mrf.mxu0 }
  0xdb   :  { %v196_v50 = vadd.f32 %v504_v48, %v439_v19  ;;  %529 = vmatprep.mubr.bf16.mxu1 %v233_v46  ;;  %v223_v56 = vmax.f32 %v185_v49, 0.0 }
  0xdc   :  { %v187_v52 = vpop.f32.mrf.mxu0  ;;  %530 = vmatmul.mubr.bf16.vlgmr.msra.gmra.mxu1 %v234_v47 }
  0xdd   :  { %v188_v53 = vadd.f32 %v439_v19, %v187_v52  ;;  %v226_v54 = vmax.f32 %v196_v50, 0.0 }
  0xde   :  { %v507_v55 = vpop.f32.mrf.mxu0 }
  0xdf   :  { %v224_v57 = vmax.f32 %v188_v53, 0.0  ;;  %v236_v61 = vpack.c.bf16 %v226_v54, %v225_v58  ;;  %v209_v1 = vadd.f32 %v507_v55, %v439_v19 }
  0xe0   :  { %v200_v59 = vpop.f32.mrf.mxu0 }
  0xe1   :  { %v235_v60 = vpack.c.bf16 %v224_v57, %v223_v56  ;;  %v201_v63 = vadd.f32 %v439_v19, %v200_v59  ;;  %v229_v7 = vmax.f32 %v209_v1, 0.0 }
  0xe2   :  { %v508_v62 = vpop.f32.mrf.mxu0 }
  0xe3   :  { %v212_v0 = vadd.f32 %v508_v62, %v439_v19  ;;  %533 = vmatprep.mubr.bf16.mxu1 %v235_v60  ;;  %v227_v5 = vmax.f32 %v201_v63, 0.0 }
  0xe4   :  { %v203_v2 = vpop.f32.mrf.mxu0  ;;  %534 = vmatmul.mubr.bf16.gmra.mxu1 %v236_v61 }
  0xe5   :  { %v204_v3 = vadd.f32 %v439_v19, %v203_v2  ;;  %v230_v4 = vmax.f32 %v212_v0, 0.0 }
  0xe7   :  { %v228_v6 = vmax.f32 %v204_v3, 0.0  ;;  %v238_v9 = vpack.c.bf16 %v230_v4, %v229_v7 }
  0xe9   :  { %v237_v8 = vpack.c.bf16 %v228_v6, %v227_v5 }
  0xeb   :  { %537 = vmatprep.mubr.bf16.mxu1 %v237_v8 }
  0xec   :  { %538 = vmatmul.mubr.bf16.gmra.mxu1 %v238_v9 }
 0x194   :  { %v527_v11 = vpop.f32.mrf.mxu0 }
 0x195   :  { %v353_v12 = vadd.f32 %v527_v11, %v457_v10 }
 0x196   :  { %v344_v13 = vpop.f32.mrf.mxu0 }
 0x197   :  { %409 = vst [vmem:[#allocation2 + $0x10] sm:$0xff] %v353_v12  ;;  %v345_v14 = vadd.f32 %v457_v10, %v344_v13 }
 0x198   :  { %v528_v15 = vpop.f32.mrf.mxu0 }
 0x199   :  { %407 = vst [vmem:[#allocation2] sm:$0xff] %v345_v14  ;;  %v356_v16 = vadd.f32 %v528_v15, %v457_v10 }
 0x19a   :  { %v347_v17 = vpop.f32.mrf.mxu0 }
 0x19b   :  { %410 = vst [vmem:[#allocation2 + $0x18] sm:$0xff] %v356_v16  ;;  %v348_v18 = vadd.f32 %v457_v10, %v347_v17 }
 0x19c   :  { %v531_v19 = vpop.f32.mrf.mxu1 }
 0x19d   :  { %408 = vst [vmem:[#allocation2 + $0x8] sm:$0xff] %v348_v18  ;;  %v369_v20 = vadd.f32 %v531_v19, %v457_v10 }
 0x19e   :  { %v360_v21 = vpop.f32.mrf.mxu1 }
 0x19f   :  { %413 = vst [vmem:[#allocation2 + $0x30] sm:$0xff] %v369_v20  ;;  %v361_v22 = vadd.f32 %v457_v10, %v360_v21 }
 0x1a0   :  { %v532_v23 = vpop.f32.mrf.mxu1 }
 0x1a1   :  { %411 = vst [vmem:[#allocation2 + $0x20] sm:$0xff] %v361_v22  ;;  %v372_v24 = vadd.f32 %v532_v23, %v457_v10 }
 0x1a2   :  { %v363_v25 = vpop.f32.mrf.mxu1 }
 0x1a3   :  { %414 = vst [vmem:[#allocation2 + $0x38] sm:$0xff] %v372_v24  ;;  %v364_v26 = vadd.f32 %v457_v10, %v363_v25 }
 0x1a4   :  { %v535_v27 = vpop.f32.mrf.mxu1 }
 0x1a5   :  { %412 = vst [vmem:[#allocation2 + $0x28] sm:$0xff] %v364_v26  ;;  %v385_v28 = vadd.f32 %v535_v27, %v457_v10 }
 0x1a6   :  { %v376_v29 = vpop.f32.mrf.mxu1 }
 0x1a7   :  { %417 = vst [vmem:[#allocation2 + $0x50] sm:$0xff] %v385_v28  ;;  %v377_v30 = vadd.f32 %v457_v10, %v376_v29 }
 0x1a8   :  { %v536_v31 = vpop.f32.mrf.mxu1 }
 0x1a9   :  { %415 = vst [vmem:[#allocation2 + $0x40] sm:$0xff] %v377_v30  ;;  %v388_v32 = vadd.f32 %v536_v31, %v457_v10 }
 0x1aa   :  { %v379_v33 = vpop.f32.mrf.mxu1 }
 0x1ab   :  { %418 = vst [vmem:[#allocation2 + $0x58] sm:$0xff] %v388_v32  ;;  %v380_v34 = vadd.f32 %v457_v10, %v379_v33 }
 0x1ac   :  { %v539_v35 = vpop.f32.mrf.mxu1 }
 0x1ad   :  { %416 = vst [vmem:[#allocation2 + $0x48] sm:$0xff] %v380_v34  ;;  %v401_v36 = vadd.f32 %v539_v35, %v457_v10 }
 0x1ae   :  { %v392_v37 = vpop.f32.mrf.mxu1 }
 0x1af   :  { %421 = vst [vmem:[#allocation2 + $0x70] sm:$0xff] %v401_v36  ;;  %v393_v38 = vadd.f32 %v457_v10, %v392_v37 }
 0x1b0   :  { %v540_v39 = vpop.f32.mrf.mxu1 }
 0x1b1   :  { %419 = vst [vmem:[#allocation2 + $0x60] sm:$0xff] %v393_v38  ;;  %v404_v40 = vadd.f32 %v540_v39, %v457_v10 }
 0x1b2   :  { %v395_v41 = vpop.f32.mrf.mxu1 }
 0x1b3   :  { %422 = vst [vmem:[#allocation2 + $0x78] sm:$0xff] %v404_v40  ;;  %v396_v42 = vadd.f32 %v457_v10, %v395_v41 }
 0x1b5   :  { %420 = vst [vmem:[#allocation2 + $0x68] sm:$0xff] %v396_v42 }
 0x1b6   :  { %588 = shalt.err (!%p585_p4)
}
 0x1b7   :  { %s600_s28 = smov 128   ;;  %s601_s29 = smov 8  }
 0x1b8   :  { %434 = dma.vmem_to_hbm [thread:$0]  %s429_s26, 2048, %s705_s5, [#allocation3], %s600_s28, %s600_s28, %s601_s29  }
 0x1b9   :  { %597 = dma.done.wait [#allocation3], 2048  }
 0x1ba   :  { %598 = vsyncadd [#allocation3], 4294965248 }
 0x1bb   :  { %438 = vsyncpa [#allocation3], 1 }

</bundles_post_ra>
